<compile_context>
chip_gen: v7x
topology: tpu7x:2x2x1
jax: 0.10.0
libtpu: 0.0.40
codegen_flags: <defaults>
</compile_context>

<pallas_src>
import functools

import jax
import jax.numpy as jnp
from jax.experimental import pallas as pl
from jax.experimental.pallas import tpu as pltpu


def _round_up(a, b):
    return (a + b - 1) // b * b


def _round_down(a, b):
    return a // b * b


def _topk_sparsify_kernel(x_ref, o_ref, *, topk, exact_ties, compute_dtype):
    """Keep the top-k values per row of the (R, L) block; zero everything else."""
    x = x_ref[...]                                             # (R, L)
    if compute_dtype is not None and x.dtype != compute_dtype:
        x = x.astype(compute_dtype)
    R, L = x.shape
    neg_inf = jnp.array(-jnp.inf, dtype=x.dtype)
    lane_idx = jax.lax.broadcasted_iota(jnp.int32, (R, L), 1)

    def step(vals):
        cur_max = jnp.max(vals, axis=-1, keepdims=True)        # XLU reduce
        is_max = vals == cur_max
        if exact_ties:
            # Lowest-index maximum -> exactly one element removed per row/step.
            cand = jnp.where(is_max, lane_idx, jnp.int32(L))
            sel_idx = jnp.min(cand, axis=-1, keepdims=True)    # XLU reduce
            sel = lane_idx == sel_idx
        else:
            # Fast path: skip the tie-break reduce.  Exact duplicates of the
            # running max would remove >1 element per step (caller opts in).
            sel = is_max
        return jnp.where(sel, neg_inf, vals)

    # Only `vals` is carried through the k steps; selected positions are
    # recovered afterwards as exactly the ones driven to -inf by the loop.
    vals = x
    if topk <= 8:
        for _ in range(topk):                                  # small static unroll
            vals = step(vals)
    else:
        # TODO(synk): for very large topk (>= ~32) a per-row threshold binary
        # search (O(log range) passes, count via MXU dot with ones) beats the
        # O(k) select-and-mask loop; not needed at these sizes.
        vals = jax.lax.fori_loop(0, topk, lambda _, v: step(v), vals, unroll=4)

    out = jnp.where(vals == neg_inf, x, jnp.zeros_like(x))
    o_ref[...] = out.astype(o_ref.dtype)


def sparsify_hw(x, topk, *, row_tile=None, assume_distinct=False,
                compute_dtype=None):
    """Equivalent of Sparsify_hw(topk)(x) for NCHW floating-point input."""
    n, c, h, w = x.shape
    L = h * w
    rows = n * c
    if not jnp.issubdtype(x.dtype, jnp.floating):
        raise ValueError("sparsify_hw expects a floating-point input")
    if not (1 <= topk <= L):
        raise ValueError(f"topk must be in [1, H*W={L}], got {topk}")

    itemsize = jnp.dtype(x.dtype).itemsize
    # Packed-vreg sublane multiple: 8 for f32, 16 for bf16, 32 for 1-byte dtypes.
    sub_mult = 8 * max(1, 4 // itemsize)

    # Generation-aware VMEM budgeting (v5e/v6e: 128 MiB, v7x: 64 MiB per TC).
    try:
        vmem_cap = int(getattr(pltpu.get_tpu_info(), "vmem_capacity_bytes",
                               64 * 1024 * 1024))
    except Exception:  # e.g. interpret mode / no TPU info available
        vmem_cap = 64 * 1024 * 1024
    vmem_budget = int(vmem_cap * 0.55)

    # Byte-accurate per-row working set of one block:
    #   double-buffered in + out blocks : 4 * L * itemsize
    #   x kept live for the final select: 1 * L * itemsize
    #   vals loop carry                 : 1 * L * itemsize
    #   lane_idx + cand (int32)         : 8 * L
    #   masks / misc vreg temporaries   : ~8 * L
    bytes_per_row = L * (6 * itemsize + 16)

    if row_tile is None:
        row_tile = max(sub_mult,
                       _round_down(vmem_budget // bytes_per_row, sub_mult))
        row_tile = min(row_tile, 1024)
        rows_sub = _round_up(rows, sub_mult)
        row_tile = min(row_tile, rows_sub)
        # Keep >= ~8 grid steps when rows allow: BlockSpec double-buffering
        # then overlaps DMA with compute and each v7x TensorCore gets several
        # steps after megacore sharding of the parallel axis.
        target_steps = 8
        if rows_sub >= target_steps * sub_mult:
            row_tile = min(row_tile,
                           max(sub_mult,
                               _round_down(rows_sub // target_steps, sub_mult)))
    if row_tile <= 0 or row_tile % 8 != 0:
        raise ValueError("row_tile must be a positive multiple of 8")

    x2 = x.reshape(rows, L)                 # no padding: full-extent last dim,
    grid = pl.cdiv(rows, row_tile)          # boundary row block handled by Pallas

    est_usage = row_tile * bytes_per_row
    vmem_limit = int(min(vmem_cap * 0.9,
                         max(32 * 1024 * 1024, 1.5 * est_usage)))

    kernel = functools.partial(
        _topk_sparsify_kernel, topk=topk, exact_ties=not assume_distinct,
        compute_dtype=compute_dtype)

    out2 = pl.pallas_call(
        kernel,
        out_shape=jax.ShapeDtypeStruct((rows, L), x.dtype),
        grid_spec=pltpu.PrefetchScalarGridSpec(
            num_scalar_prefetch=0,
            grid=(grid,),
            in_specs=[pl.BlockSpec((row_tile, L), lambda i: (i, 0))],
            out_specs=pl.BlockSpec((row_tile, L), lambda i: (i, 0)),
        ),
        compiler_params=pltpu.CompilerParams(
            dimension_semantics=("parallel",),
            vmem_limit_bytes=vmem_limit,
        ),
    )(x2)

    return out2.reshape(n, c, h, w)


def _reference(x, topk):
    """Pure-JAX reference mirroring the PyTorch module."""
    n, c, h, w = x.shape
    xr = x.reshape(n, c, h * w)
    _, idx = jax.lax.top_k(xr, topk)
    mask = jnp.zeros_like(xr)
    mask = jax.vmap(jax.vmap(lambda m, i: m.at[i].set(1.0)))(mask, idx)
    return (mask * xr).reshape(n, c, h, w)


if __name__ == "__main__":
    tests = [
        ((2, 4, 16, 16), 8),    # lane-aligned L = 256, rows = 8
        ((2, 8, 14, 14), 5),    # ragged L = 196 (full-extent last-dim block)
        ((3, 5, 14, 14), 3),    # ragged rows = 15 (boundary row block)
        ((4, 32, 10, 10), 12),  # rows = 128 -> multi-step grid; topk > 8 path
    ]
    keys = jax.random.split(jax.random.PRNGKey(0), len(tests))
    for key, (shape, k) in zip(keys, tests):
        x = jax.random.normal(key, shape, dtype=jnp.float32)
        out = jax.block_until_ready(sparsify_hw(x, k))
        ref = _reference(x, k)
        assert out.shape == shape
        assert jnp.allclose(out, ref, atol=1e-6), \
            f"mismatch vs reference for shape={shape}, topk={k}"
    print("KERNEL_OK")
</pallas_src>

<mosaic_0001>
module attributes {stable_mosaic.version = 11 : i64} {
  func.func @_topk_sparsify_kernel(%arg0: i32, %arg1: memref<8x256xf32, #tpu.memory_space<vmem>>, %arg2: memref<8x256xf32, #tpu.memory_space<vmem>>) attributes {dimension_semantics = [#tpu.dimension_semantics<parallel>], iteration_bounds = array<i64: 1>, scalar_prefetch = 0 : i64, scratch_operands = 0 : i64, tpu.core_type = #tpu.core_type<tc>, window_params = [{transform_indices = @transform_0, window_bounds = array<i64: 8, 256>}, {transform_indices = @transform_1, window_bounds = array<i64: 8, 256>}]} {
    %c0 = arith.constant 0 : index
    %c0_0 = arith.constant 0 : index
    %0 = vector.load %arg1[%c0, %c0_0] : memref<8x256xf32, #tpu.memory_space<vmem>>, vector<8x256xf32>
    %1 = tpu.iota {dimensions = array<i32: 1>} : vector<8x256xi32>
    %cst = arith.constant dense<0xFF800000> : vector<8xf32>
    %2 = vector.multi_reduction <maximumf>, %0, %cst [1] : vector<8x256xf32> to vector<8xf32>
    %3 = vector.shape_cast %2 : vector<8xf32> to vector<8x1xf32>
    %4 = vector.broadcast %3 : vector<8x1xf32> to vector<8x256xf32>
    %5 = arith.cmpf oeq, %0, %4 : vector<8x256xf32>
    %c256_i32 = arith.constant 256 : i32
    %6 = vector.broadcast %c256_i32 : i32 to vector<8x256xi32>
    %7 = arith.select %5, %1, %6 : vector<8x256xi1>, vector<8x256xi32>
    %cst_1 = arith.constant dense<2147483647> : vector<8xi32>
    %8 = vector.multi_reduction <minsi>, %7, %cst_1 [1] : vector<8x256xi32> to vector<8xi32>
    %9 = vector.shape_cast %8 : vector<8xi32> to vector<8x1xi32>
    %10 = vector.broadcast %9 : vector<8x1xi32> to vector<8x256xi32>
    %11 = arith.cmpi eq, %1, %10 : vector<8x256xi32>
    %cst_2 = arith.constant 0xFF800000 : f32
    %12 = vector.broadcast %cst_2 : f32 to vector<8x256xf32>
    %13 = arith.select %11, %12, %0 : vector<8x256xi1>, vector<8x256xf32>
    %cst_3 = arith.constant dense<0xFF800000> : vector<8xf32>
    %14 = vector.multi_reduction <maximumf>, %13, %cst_3 [1] : vector<8x256xf32> to vector<8xf32>
    %15 = vector.shape_cast %14 : vector<8xf32> to vector<8x1xf32>
    %16 = vector.broadcast %15 : vector<8x1xf32> to vector<8x256xf32>
    %17 = arith.cmpf oeq, %13, %16 : vector<8x256xf32>
    %c256_i32_4 = arith.constant 256 : i32
    %18 = vector.broadcast %c256_i32_4 : i32 to vector<8x256xi32>
    %19 = arith.select %17, %1, %18 : vector<8x256xi1>, vector<8x256xi32>
    %cst_5 = arith.constant dense<2147483647> : vector<8xi32>
    %20 = vector.multi_reduction <minsi>, %19, %cst_5 [1] : vector<8x256xi32> to vector<8xi32>
    %21 = vector.shape_cast %20 : vector<8xi32> to vector<8x1xi32>
    %22 = vector.broadcast %21 : vector<8x1xi32> to vector<8x256xi32>
    %23 = arith.cmpi eq, %1, %22 : vector<8x256xi32>
    %cst_6 = arith.constant 0xFF800000 : f32
    %24 = vector.broadcast %cst_6 : f32 to vector<8x256xf32>
    %25 = arith.select %23, %24, %13 : vector<8x256xi1>, vector<8x256xf32>
    %cst_7 = arith.constant dense<0xFF800000> : vector<8xf32>
    %26 = vector.multi_reduction <maximumf>, %25, %cst_7 [1] : vector<8x256xf32> to vector<8xf32>
    %27 = vector.shape_cast %26 : vector<8xf32> to vector<8x1xf32>
    %28 = vector.broadcast %27 : vector<8x1xf32> to vector<8x256xf32>
    %29 = arith.cmpf oeq, %25, %28 : vector<8x256xf32>
    %c256_i32_8 = arith.constant 256 : i32
    %30 = vector.broadcast %c256_i32_8 : i32 to vector<8x256xi32>
    %31 = arith.select %29, %1, %30 : vector<8x256xi1>, vector<8x256xi32>
    %cst_9 = arith.constant dense<2147483647> : vector<8xi32>
    %32 = vector.multi_reduction <minsi>, %31, %cst_9 [1] : vector<8x256xi32> to vector<8xi32>
    %33 = vector.shape_cast %32 : vector<8xi32> to vector<8x1xi32>
    %34 = vector.broadcast %33 : vector<8x1xi32> to vector<8x256xi32>
    %35 = arith.cmpi eq, %1, %34 : vector<8x256xi32>
    %cst_10 = arith.constant 0xFF800000 : f32
    %36 = vector.broadcast %cst_10 : f32 to vector<8x256xf32>
    %37 = arith.select %35, %36, %25 : vector<8x256xi1>, vector<8x256xf32>
    %cst_11 = arith.constant dense<0xFF800000> : vector<8xf32>
    %38 = vector.multi_reduction <maximumf>, %37, %cst_11 [1] : vector<8x256xf32> to vector<8xf32>
    %39 = vector.shape_cast %38 : vector<8xf32> to vector<8x1xf32>
    %40 = vector.broadcast %39 : vector<8x1xf32> to vector<8x256xf32>
    %41 = arith.cmpf oeq, %37, %40 : vector<8x256xf32>
    %c256_i32_12 = arith.constant 256 : i32
    %42 = vector.broadcast %c256_i32_12 : i32 to vector<8x256xi32>
    %43 = arith.select %41, %1, %42 : vector<8x256xi1>, vector<8x256xi32>
    %cst_13 = arith.constant dense<2147483647> : vector<8xi32>
    %44 = vector.multi_reduction <minsi>, %43, %cst_13 [1] : vector<8x256xi32> to vector<8xi32>
    %45 = vector.shape_cast %44 : vector<8xi32> to vector<8x1xi32>
    %46 = vector.broadcast %45 : vector<8x1xi32> to vector<8x256xi32>
    %47 = arith.cmpi eq, %1, %46 : vector<8x256xi32>
    %cst_14 = arith.constant 0xFF800000 : f32
    %48 = vector.broadcast %cst_14 : f32 to vector<8x256xf32>
    %49 = arith.select %47, %48, %37 : vector<8x256xi1>, vector<8x256xf32>
    %cst_15 = arith.constant dense<0xFF800000> : vector<8xf32>
    %50 = vector.multi_reduction <maximumf>, %49, %cst_15 [1] : vector<8x256xf32> to vector<8xf32>
    %51 = vector.shape_cast %50 : vector<8xf32> to vector<8x1xf32>
    %52 = vector.broadcast %51 : vector<8x1xf32> to vector<8x256xf32>
    %53 = arith.cmpf oeq, %49, %52 : vector<8x256xf32>
    %c256_i32_16 = arith.constant 256 : i32
    %54 = vector.broadcast %c256_i32_16 : i32 to vector<8x256xi32>
    %55 = arith.select %53, %1, %54 : vector<8x256xi1>, vector<8x256xi32>
    %cst_17 = arith.constant dense<2147483647> : vector<8xi32>
    %56 = vector.multi_reduction <minsi>, %55, %cst_17 [1] : vector<8x256xi32> to vector<8xi32>
    %57 = vector.shape_cast %56 : vector<8xi32> to vector<8x1xi32>
    %58 = vector.broadcast %57 : vector<8x1xi32> to vector<8x256xi32>
    %59 = arith.cmpi eq, %1, %58 : vector<8x256xi32>
    %cst_18 = arith.constant 0xFF800000 : f32
    %60 = vector.broadcast %cst_18 : f32 to vector<8x256xf32>
    %61 = arith.select %59, %60, %49 : vector<8x256xi1>, vector<8x256xf32>
    %cst_19 = arith.constant dense<0xFF800000> : vector<8xf32>
    %62 = vector.multi_reduction <maximumf>, %61, %cst_19 [1] : vector<8x256xf32> to vector<8xf32>
    %63 = vector.shape_cast %62 : vector<8xf32> to vector<8x1xf32>
    %64 = vector.broadcast %63 : vector<8x1xf32> to vector<8x256xf32>
    %65 = arith.cmpf oeq, %61, %64 : vector<8x256xf32>
    %c256_i32_20 = arith.constant 256 : i32
    %66 = vector.broadcast %c256_i32_20 : i32 to vector<8x256xi32>
    %67 = arith.select %65, %1, %66 : vector<8x256xi1>, vector<8x256xi32>
    %cst_21 = arith.constant dense<2147483647> : vector<8xi32>
    %68 = vector.multi_reduction <minsi>, %67, %cst_21 [1] : vector<8x256xi32> to vector<8xi32>
    %69 = vector.shape_cast %68 : vector<8xi32> to vector<8x1xi32>
    %70 = vector.broadcast %69 : vector<8x1xi32> to vector<8x256xi32>
    %71 = arith.cmpi eq, %1, %70 : vector<8x256xi32>
    %cst_22 = arith.constant 0xFF800000 : f32
    %72 = vector.broadcast %cst_22 : f32 to vector<8x256xf32>
    %73 = arith.select %71, %72, %61 : vector<8x256xi1>, vector<8x256xf32>
    %cst_23 = arith.constant dense<0xFF800000> : vector<8xf32>
    %74 = vector.multi_reduction <maximumf>, %73, %cst_23 [1] : vector<8x256xf32> to vector<8xf32>
    %75 = vector.shape_cast %74 : vector<8xf32> to vector<8x1xf32>
    %76 = vector.broadcast %75 : vector<8x1xf32> to vector<8x256xf32>
    %77 = arith.cmpf oeq, %73, %76 : vector<8x256xf32>
    %c256_i32_24 = arith.constant 256 : i32
    %78 = vector.broadcast %c256_i32_24 : i32 to vector<8x256xi32>
    %79 = arith.select %77, %1, %78 : vector<8x256xi1>, vector<8x256xi32>
    %cst_25 = arith.constant dense<2147483647> : vector<8xi32>
    %80 = vector.multi_reduction <minsi>, %79, %cst_25 [1] : vector<8x256xi32> to vector<8xi32>
    %81 = vector.shape_cast %80 : vector<8xi32> to vector<8x1xi32>
    %82 = vector.broadcast %81 : vector<8x1xi32> to vector<8x256xi32>
    %83 = arith.cmpi eq, %1, %82 : vector<8x256xi32>
    %cst_26 = arith.constant 0xFF800000 : f32
    %84 = vector.broadcast %cst_26 : f32 to vector<8x256xf32>
    %85 = arith.select %83, %84, %73 : vector<8x256xi1>, vector<8x256xf32>
    %cst_27 = arith.constant dense<0xFF800000> : vector<8xf32>
    %86 = vector.multi_reduction <maximumf>, %85, %cst_27 [1] : vector<8x256xf32> to vector<8xf32>
    %87 = vector.shape_cast %86 : vector<8xf32> to vector<8x1xf32>
    %88 = vector.broadcast %87 : vector<8x1xf32> to vector<8x256xf32>
    %89 = arith.cmpf oeq, %85, %88 : vector<8x256xf32>
    %c256_i32_28 = arith.constant 256 : i32
    %90 = vector.broadcast %c256_i32_28 : i32 to vector<8x256xi32>
    %91 = arith.select %89, %1, %90 : vector<8x256xi1>, vector<8x256xi32>
    %cst_29 = arith.constant dense<2147483647> : vector<8xi32>
    %92 = vector.multi_reduction <minsi>, %91, %cst_29 [1] : vector<8x256xi32> to vector<8xi32>
    %93 = vector.shape_cast %92 : vector<8xi32> to vector<8x1xi32>
    %94 = vector.broadcast %93 : vector<8x1xi32> to vector<8x256xi32>
    %95 = arith.cmpi eq, %1, %94 : vector<8x256xi32>
    %cst_30 = arith.constant 0xFF800000 : f32
    %96 = vector.broadcast %cst_30 : f32 to vector<8x256xf32>
    %97 = arith.select %95, %96, %85 : vector<8x256xi1>, vector<8x256xf32>
    %cst_31 = arith.constant 0xFF800000 : f32
    %98 = vector.broadcast %cst_31 : f32 to vector<8x256xf32>
    %99 = arith.cmpf oeq, %97, %98 : vector<8x256xf32>
    %cst_32 = arith.constant 0.000000e+00 : f32
    %100 = vector.broadcast %cst_32 : f32 to vector<8x256xf32>
    %101 = arith.select %99, %0, %100 : vector<8x256xi1>, vector<8x256xf32>
    %c0_33 = arith.constant 0 : index
    %c0_34 = arith.constant 0 : index
    %102 = vector.load %arg2[%c0_33, %c0_34] : memref<8x256xf32, #tpu.memory_space<vmem>>, vector<8x256xf32>
    tpu.vector_store %arg2[%c0_33, %c0_34], %101 {strides = array<i32>} : memref<8x256xf32, #tpu.memory_space<vmem>>, vector<8x256xf32>,
    return
  }
  func.func @transform_0(%arg0: i32) -> (i32, i32) {
    %c0_i32 = arith.constant 0 : i32
    %c0_i32_0 = arith.constant 0 : i32
    return %arg0, %c0_i32 : i32, i32
  }
  func.func @transform_1(%arg0: i32) -> (i32, i32) {
    %c0_i32 = arith.constant 0 : i32
    %c0_i32_0 = arith.constant 0 : i32
    return %arg0, %c0_i32 : i32, i32
  }
}

</mosaic_0001>

<bundles_post_ra>
// kernel: tpu_custom_call.1
= control target key start
LH: loop header
LB: loop body
LE: loop exit
PB: predicated region body
PF: predicated region fallthrough
CT: control target
= control target key end

     0   :  { %6 = vsyncpa [#allocation3], 0  ;;  %s398_s0 = inlined_call_operand.hbm [shape: f32[8,256], index: 0, kind: input, shape index: {}]   ;;  %s399_s1 = inlined_call_operand.hbm [shape: f32[8,256], index: 1, kind: output, shape index: {}]  }
   0x1   :  { %7 = vsyncpa [#allocation4], 0  ;;  %s313_s6 = smov [#allocation2]   ;;  %s265_s10 = scalar_lea.hbm %s398_s0, 256 }
   0x2   :  { %s14_s7 = sshll.u32 %s313_s6, 4  ;;  %p266_p0 = scmp.ne.s32.totalorder %s398_s0, %s265_s10  ;;  %s15_s7 = int_to_ptr.vmem [resolvable:$true] %s14_s7 }
   0x3   :  { %p269_p1 = scmp.lt.u32.totalorder %s265_s10, %s398_s0 }
   0x5   :  { %p271_p2 = pnand %p269_p1, %p266_p0 }
   0x7   :  { %274 = shalt.err (!%p271_p2)
}
   0x8   :  { %s275_s15 = scalar_lea.vmem %s15_s7, 256  ;;  %p280_p4 = scmp.lt.s32.totalorder %s15_s7, %s15_s7 }
   0x9   :  { %p276_p3 = scmp.ne.s32.totalorder %s15_s7, %s275_s15  ;;  %p281_p5 = scmp.lt.s32.totalorder %s275_s15, %s275_s15 }
   0xb   :  { %p282_p6 = por %p281_p5, %p280_p4 }
   0xd   :  { %p283_p7 = pnand %p282_p6, %p276_p3 }
   0xf   :  { %286 = shalt.err (!%p283_p7)
}
  0x10   :  { %17 = dma.hbm_to_vmem [thread:$0]  %s398_s0, 256, %s15_s7, [#allocation3]  }
  0x11   :  { %309 = dma.done.wait [#allocation3], 256  }
  0x12   :  { %310 = vsyncadd [#allocation3], 4294967040  ;;  %v337_v0 = vld [vmem:[#allocation2] sm:$0xff]  ;;  %v339_v1 = vld [vmem:[#allocation2 + $0x8] sm:$0xff]  ;;  %v23_v3 = vlaneseq  ;;  %s314_s0 = smov [#allocation5]  }
  0x13   :  { %v26_v2 = vmax.f32 %v337_v0, %v339_v1  ;;  %s254_s18 = sshll.u32 %s314_s0, 4  ;;  %s255_s18 = int_to_ptr.vmem [resolvable:$true] %s254_s18 }
  0x14   :  { %v343_v4 = vand.u32 127, %v23_v3  ;;  %s287_s19 = scalar_lea.vmem %s255_s18, 256  ;;  %p292_p9 = scmp.lt.s32.totalorder %s255_s18, %s255_s18 }
  0x15   :  { %27 = vmax.xlane.f32.xlu0 %v26_v2  ;;  %p288_p8 = scmp.ne.s32.totalorder %s255_s18, %s287_s19  ;;  %p293_p10 = scmp.lt.s32.totalorder %s287_s19, %s287_s19 }
  0x16   :  { %v346_v5 = vadd.s32 128, %v343_v4 }
  0x17   :  { %p294_p11 = por %p293_p10, %p292_p9 }
  0x19   :  { %p295_p12 = pnand %p294_p11, %p288_p8 }
  0xa2   :  { %v28_v6 = vpop.xlane.xlu0 %27 }
  0xa3   :  { %vm29_vm0 = vcmp.eq.f32.partialorder %v337_v0, %v28_v6  ;;  %vm30_vm1 = vcmp.eq.f32.partialorder %v339_v1, %v28_v6 }
  0xa4   :  { %v31_v7 = vsel %vm29_vm0, %v343_v4, 256  ;;  %v32_v8 = vsel %vm30_vm1, %v346_v5, 256 }
  0xa5   :  { %vm33_vm2 = vcmp.lt.s32.totalorder %v31_v7, %v32_v8 }
  0xa6   :  { %v34_v9 = vsel %vm33_vm2, %v31_v7, %v32_v8 }
  0xa7   :  { %v36_v10 = vshra.s32 %v34_v9, 16  ;;  %v35_v12 = vand.u32 65535, %v34_v9 }
  0xa9   :  { %v38_v11 = vcvt.s32.f32 %v36_v10  ;;  %v37_v14 = vcvt.s32.f32 %v35_v12 }
  0xab   :  { %39 = vmin.xlane.f32.xlu0 %v38_v11 }
 0x138   :  { %v40_v13 = vpop.xlane.xlu0 %39 }
 0x139   :  { %vm41_vm3 = vcmp.eq.f32.partialorder %v38_v11, %v40_v13  ;;  %v46_v16 = vcvt.f32.s32 %v40_v13 }
 0x13a   :  { %v42_v15 = vsel %vm41_vm3, %v37_v14, inf }
 0x13b   :  { %43 = vmin.xlane.f32.xlu1 %v42_v15  ;;  %v47_v18 = vshll.u32 %v46_v16, 16 }
 0x1c8   :  { %v44_v17 = vpop.xlane.xlu1 %43 }
 0x1c9   :  { %v45_v19 = vcvt.f32.s32 %v44_v17 }
 0x1cb   :  { %v48_v20 = vadd.s32 %v47_v18, %v45_v19 }
 0x1cd   :  { %vm49_vm4 = vcmp.eq.s32.totalorder %v343_v4, %v48_v20  ;;  %vm50_vm5 = vcmp.eq.s32.totalorder %v346_v5, %v48_v20 }
 0x1ce   :  { %v51_v21 = vsel %vm49_vm4, -inf, %v337_v0  ;;  %v52_v22 = vsel %vm50_vm5, -inf, %v339_v1 }
 0x1cf   :  { %v53_v23 = vmax.f32 %v51_v21, %v52_v22 }
 0x1d1   :  { %54 = vmax.xlane.f32.xlu1 %v53_v23 }
 0x25e   :  { %v55_v24 = vpop.xlane.xlu1 %54 }
 0x25f   :  { %vm56_vm6 = vcmp.eq.f32.partialorder %v51_v21, %v55_v24  ;;  %vm57_vm7 = vcmp.eq.f32.partialorder %v52_v22, %v55_v24 }
 0x260   :  { %v58_v25 = vsel %vm56_vm6, %v343_v4, 256  ;;  %v59_v26 = vsel %vm57_vm7, %v346_v5, 256 }
 0x261   :  { %vm60_vm8 = vcmp.lt.s32.totalorder %v58_v25, %v59_v26 }
 0x262   :  { %v61_v27 = vsel %vm60_vm8, %v58_v25, %v59_v26 }
 0x263   :  { %v63_v28 = vshra.s32 %v61_v27, 16  ;;  %v62_v30 = vand.u32 65535, %v61_v27 }
 0x265   :  { %v65_v29 = vcvt.s32.f32 %v63_v28  ;;  %v64_v32 = vcvt.s32.f32 %v62_v30 }
 0x267   :  { %66 = vmin.xlane.f32.xlu0 %v65_v29 }
 0x2f4   :  { %v67_v31 = vpop.xlane.xlu0 %66 }
 0x2f5   :  { %vm68_vm9 = vcmp.eq.f32.partialorder %v65_v29, %v67_v31  ;;  %v73_v34 = vcvt.f32.s32 %v67_v31 }
 0x2f6   :  { %v69_v33 = vsel %vm68_vm9, %v64_v32, inf }
 0x2f7   :  { %70 = vmin.xlane.f32.xlu1 %v69_v33  ;;  %v74_v36 = vshll.u32 %v73_v34, 16 }
 0x384   :  { %v71_v35 = vpop.xlane.xlu1 %70 }
 0x385   :  { %v72_v37 = vcvt.f32.s32 %v71_v35 }
 0x387   :  { %v75_v38 = vadd.s32 %v74_v36, %v72_v37 }
 0x389   :  { %vm76_vm10 = vcmp.eq.s32.totalorder %v343_v4, %v75_v38  ;;  %vm77_vm11 = vcmp.eq.s32.totalorder %v346_v5, %v75_v38 }
 0x38a   :  { %v78_v39 = vsel %vm76_vm10, -inf, %v51_v21  ;;  %v79_v40 = vsel %vm77_vm11, -inf, %v52_v22 }
 0x38b   :  { %v80_v41 = vmax.f32 %v78_v39, %v79_v40 }
 0x38d   :  { %81 = vmax.xlane.f32.xlu0 %v80_v41 }
 0x41a   :  { %v82_v42 = vpop.xlane.xlu0 %81 }
 0x41b   :  { %vm83_vm12 = vcmp.eq.f32.partialorder %v78_v39, %v82_v42  ;;  %vm84_vm13 = vcmp.eq.f32.partialorder %v79_v40, %v82_v42 }
 0x41c   :  { %v85_v43 = vsel %vm83_vm12, %v343_v4, 256  ;;  %v86_v44 = vsel %vm84_vm13, %v346_v5, 256 }
 0x41d   :  { %vm87_vm14 = vcmp.lt.s32.totalorder %v85_v43, %v86_v44 }
 0x41e   :  { %v88_v45 = vsel %vm87_vm14, %v85_v43, %v86_v44 }
 0x41f   :  { %v90_v46 = vshra.s32 %v88_v45, 16  ;;  %v89_v48 = vand.u32 65535, %v88_v45 }
 0x421   :  { %v92_v47 = vcvt.s32.f32 %v90_v46  ;;  %v91_v50 = vcvt.s32.f32 %v89_v48 }
 0x423   :  { %93 = vmin.xlane.f32.xlu1 %v92_v47 }
 0x4b0   :  { %v94_v49 = vpop.xlane.xlu1 %93 }
 0x4b1   :  { %vm95_vm15 = vcmp.eq.f32.partialorder %v92_v47, %v94_v49  ;;  %v100_v52 = vcvt.f32.s32 %v94_v49 }
 0x4b2   :  { %v96_v51 = vsel %vm95_vm15, %v91_v50, inf }
 0x4b3   :  { %97 = vmin.xlane.f32.xlu0 %v96_v51  ;;  %v101_v54 = vshll.u32 %v100_v52, 16 }
 0x540   :  { %v98_v53 = vpop.xlane.xlu0 %97 }
 0x541   :  { %v99_v55 = vcvt.f32.s32 %v98_v53 }
 0x543   :  { %v102_v56 = vadd.s32 %v101_v54, %v99_v55 }
 0x545   :  { %vm103_vm0 = vcmp.eq.s32.totalorder %v343_v4, %v102_v56  ;;  %vm104_vm1 = vcmp.eq.s32.totalorder %v346_v5, %v102_v56 }
 0x546   :  { %v105_v57 = vsel %vm103_vm0, -inf, %v78_v39  ;;  %v106_v58 = vsel %vm104_vm1, -inf, %v79_v40 }
 0x547   :  { %v107_v59 = vmax.f32 %v105_v57, %v106_v58 }
 0x549   :  { %108 = vmax.xlane.f32.xlu1 %v107_v59 }
 0x5d6   :  { %v109_v60 = vpop.xlane.xlu1 %108 }
 0x5d7   :  { %vm110_vm2 = vcmp.eq.f32.partialorder %v105_v57, %v109_v60  ;;  %vm111_vm3 = vcmp.eq.f32.partialorder %v106_v58, %v109_v60 }
 0x5d8   :  { %v112_v61 = vsel %vm110_vm2, %v343_v4, 256  ;;  %v113_v62 = vsel %vm111_vm3, %v346_v5, 256 }
 0x5d9   :  { %vm114_vm4 = vcmp.lt.s32.totalorder %v112_v61, %v113_v62 }
 0x5da   :  { %v115_v63 = vsel %vm114_vm4, %v112_v61, %v113_v62 }
 0x5db   :  { %v117_v2 = vshra.s32 %v115_v63, 16  ;;  %v116_v6 = vand.u32 65535, %v115_v63 }
 0x5dd   :  { %v119_v3 = vcvt.s32.f32 %v117_v2  ;;  %v118_v8 = vcvt.s32.f32 %v116_v6 }
 0x5df   :  { %120 = vmin.xlane.f32.xlu0 %v119_v3 }
 0x66c   :  { %v121_v7 = vpop.xlane.xlu0 %120 }
 0x66d   :  { %vm122_vm5 = vcmp.eq.f32.partialorder %v119_v3, %v121_v7  ;;  %v127_v10 = vcvt.f32.s32 %v121_v7 }
 0x66e   :  { %v123_v9 = vsel %vm122_vm5, %v118_v8, inf }
 0x66f   :  { %124 = vmin.xlane.f32.xlu1 %v123_v9  ;;  %v128_v12 = vshll.u32 %v127_v10, 16 }
 0x6fc   :  { %v125_v11 = vpop.xlane.xlu1 %124 }
 0x6fd   :  { %v126_v13 = vcvt.f32.s32 %v125_v11 }
 0x6ff   :  { %v129_v14 = vadd.s32 %v128_v12, %v126_v13 }
 0x701   :  { %vm130_vm6 = vcmp.eq.s32.totalorder %v343_v4, %v129_v14  ;;  %vm131_vm7 = vcmp.eq.s32.totalorder %v346_v5, %v129_v14 }
 0x702   :  { %v132_v15 = vsel %vm130_vm6, -inf, %v105_v57  ;;  %v133_v16 = vsel %vm131_vm7, -inf, %v106_v58 }
 0x703   :  { %v134_v17 = vmax.f32 %v132_v15, %v133_v16 }
 0x705   :  { %135 = vmax.xlane.f32.xlu0 %v134_v17 }
 0x792   :  { %v136_v18 = vpop.xlane.xlu0 %135 }
 0x793   :  { %vm137_vm8 = vcmp.eq.f32.partialorder %v132_v15, %v136_v18  ;;  %vm138_vm9 = vcmp.eq.f32.partialorder %v133_v16, %v136_v18 }
 0x794   :  { %v139_v19 = vsel %vm137_vm8, %v343_v4, 256  ;;  %v140_v20 = vsel %vm138_vm9, %v346_v5, 256 }
 0x795   :  { %vm141_vm10 = vcmp.lt.s32.totalorder %v139_v19, %v140_v20 }
 0x796   :  { %v142_v21 = vsel %vm141_vm10, %v139_v19, %v140_v20 }
 0x797   :  { %v144_v22 = vshra.s32 %v142_v21, 16  ;;  %v143_v24 = vand.u32 65535, %v142_v21 }
 0x799   :  { %v146_v23 = vcvt.s32.f32 %v144_v22  ;;  %v145_v26 = vcvt.s32.f32 %v143_v24 }
 0x79b   :  { %147 = vmin.xlane.f32.xlu1 %v146_v23 }
 0x828   :  { %v148_v25 = vpop.xlane.xlu1 %147 }
 0x829   :  { %vm149_vm11 = vcmp.eq.f32.partialorder %v146_v23, %v148_v25  ;;  %v154_v28 = vcvt.f32.s32 %v148_v25 }
 0x82a   :  { %v150_v27 = vsel %vm149_vm11, %v145_v26, inf }
 0x82b   :  { %151 = vmin.xlane.f32.xlu0 %v150_v27  ;;  %v155_v30 = vshll.u32 %v154_v28, 16 }
 0x8b8   :  { %v152_v29 = vpop.xlane.xlu0 %151 }
 0x8b9   :  { %v153_v31 = vcvt.f32.s32 %v152_v29 }
 0x8bb   :  { %v156_v32 = vadd.s32 %v155_v30, %v153_v31 }
 0x8bd   :  { %vm157_vm12 = vcmp.eq.s32.totalorder %v343_v4, %v156_v32  ;;  %vm158_vm13 = vcmp.eq.s32.totalorder %v346_v5, %v156_v32 }
 0x8be   :  { %v159_v33 = vsel %vm157_vm12, -inf, %v132_v15  ;;  %v160_v34 = vsel %vm158_vm13, -inf, %v133_v16 }
 0x8bf   :  { %v161_v35 = vmax.f32 %v159_v33, %v160_v34 }
 0x8c1   :  { %162 = vmax.xlane.f32.xlu1 %v161_v35 }
 0x94e   :  { %v163_v36 = vpop.xlane.xlu1 %162 }
 0x94f   :  { %vm164_vm14 = vcmp.eq.f32.partialorder %v159_v33, %v163_v36  ;;  %vm165_vm15 = vcmp.eq.f32.partialorder %v160_v34, %v163_v36 }
 0x950   :  { %v166_v37 = vsel %vm164_vm14, %v343_v4, 256  ;;  %v167_v38 = vsel %vm165_vm15, %v346_v5, 256 }
 0x951   :  { %vm168_vm0 = vcmp.lt.s32.totalorder %v166_v37, %v167_v38 }
 0x952   :  { %v169_v39 = vsel %vm168_vm0, %v166_v37, %v167_v38 }
 0x953   :  { %v171_v40 = vshra.s32 %v169_v39, 16  ;;  %v170_v42 = vand.u32 65535, %v169_v39 }
 0x955   :  { %v173_v41 = vcvt.s32.f32 %v171_v40  ;;  %v172_v44 = vcvt.s32.f32 %v170_v42 }
 0x957   :  { %174 = vmin.xlane.f32.xlu0 %v173_v41 }
 0x9e4   :  { %v175_v43 = vpop.xlane.xlu0 %174 }
 0x9e5   :  { %vm176_vm1 = vcmp.eq.f32.partialorder %v173_v41, %v175_v43  ;;  %v181_v46 = vcvt.f32.s32 %v175_v43 }
 0x9e6   :  { %v177_v45 = vsel %vm176_vm1, %v172_v44, inf }
 0x9e7   :  { %178 = vmin.xlane.f32.xlu1 %v177_v45  ;;  %v182_v48 = vshll.u32 %v181_v46, 16 }
 0xa74   :  { %v179_v47 = vpop.xlane.xlu1 %178 }
 0xa75   :  { %v180_v49 = vcvt.f32.s32 %v179_v47 }
 0xa77   :  { %v183_v50 = vadd.s32 %v182_v48, %v180_v49 }
 0xa79   :  { %vm184_vm2 = vcmp.eq.s32.totalorder %v343_v4, %v183_v50  ;;  %vm185_vm3 = vcmp.eq.s32.totalorder %v346_v5, %v183_v50 }
 0xa7a   :  { %v186_v51 = vsel %vm184_vm2, -inf, %v159_v33  ;;  %v187_v52 = vsel %vm185_vm3, -inf, %v160_v34 }
 0xa7b   :  { %v188_v53 = vmax.f32 %v186_v51, %v187_v52 }
 0xa7d   :  { %189 = vmax.xlane.f32.xlu0 %v188_v53 }
 0xb0a   :  { %v190_v54 = vpop.xlane.xlu0 %189 }
 0xb0b   :  { %vm191_vm4 = vcmp.eq.f32.partialorder %v186_v51, %v190_v54  ;;  %vm192_vm5 = vcmp.eq.f32.partialorder %v187_v52, %v190_v54 }
 0xb0c   :  { %v193_v55 = vsel %vm191_vm4, %v343_v4, 256  ;;  %v194_v56 = vsel %vm192_vm5, %v346_v5, 256 }
 0xb0d   :  { %vm195_vm6 = vcmp.lt.s32.totalorder %v193_v55, %v194_v56 }
 0xb0e   :  { %v196_v57 = vsel %vm195_vm6, %v193_v55, %v194_v56 }
 0xb0f   :  { %v198_v58 = vshra.s32 %v196_v57, 16  ;;  %v197_v60 = vand.u32 65535, %v196_v57 }
 0xb11   :  { %v200_v59 = vcvt.s32.f32 %v198_v58  ;;  %v199_v62 = vcvt.s32.f32 %v197_v60 }
 0xb13   :  { %201 = vmin.xlane.f32.xlu1 %v200_v59 }
 0xba0   :  { %v202_v61 = vpop.xlane.xlu1 %201 }
 0xba1   :  { %vm203_vm7 = vcmp.eq.f32.partialorder %v200_v59, %v202_v61  ;;  %v208_v2 = vcvt.f32.s32 %v202_v61 }
 0xba2   :  { %v204_v63 = vsel %vm203_vm7, %v199_v62, inf }
 0xba3   :  { %205 = vmin.xlane.f32.xlu0 %v204_v63  ;;  %v209_v6 = vshll.u32 %v208_v2, 16 }
 0xc30   :  { %v206_v3 = vpop.xlane.xlu0 %205 }
 0xc31   :  { %v207_v7 = vcvt.f32.s32 %v206_v3 }
 0xc33   :  { %v210_v8 = vadd.s32 %v209_v6, %v207_v7 }
 0xc35   :  { %vm211_vm8 = vcmp.eq.s32.totalorder %v343_v4, %v210_v8  ;;  %vm212_vm9 = vcmp.eq.s32.totalorder %v346_v5, %v210_v8 }
 0xc36   :  { %v213_v9 = vsel %vm211_vm8, -inf, %v186_v51  ;;  %v214_v10 = vsel %vm212_vm9, -inf, %v187_v52 }
 0xc37   :  { %v215_v11 = vmax.f32 %v213_v9, %v214_v10 }
 0xc39   :  { %216 = vmax.xlane.f32.xlu1 %v215_v11 }
 0xcc6   :  { %v217_v12 = vpop.xlane.xlu1 %216 }
 0xcc7   :  { %vm218_vm10 = vcmp.eq.f32.partialorder %v213_v9, %v217_v12  ;;  %vm219_vm11 = vcmp.eq.f32.partialorder %v214_v10, %v217_v12 }
 0xcc8   :  { %v220_v13 = vsel %vm218_vm10, %v343_v4, 256  ;;  %v221_v14 = vsel %vm219_vm11, %v346_v5, 256 }
 0xcc9   :  { %vm222_vm12 = vcmp.lt.s32.totalorder %v220_v13, %v221_v14 }
 0xcca   :  { %v223_v15 = vsel %vm222_vm12, %v220_v13, %v221_v14 }
 0xccb   :  { %v225_v16 = vshra.s32 %v223_v15, 16  ;;  %v224_v18 = vand.u32 65535, %v223_v15 }
 0xccd   :  { %v227_v17 = vcvt.s32.f32 %v225_v16  ;;  %v226_v20 = vcvt.s32.f32 %v224_v18 }
 0xccf   :  { %228 = vmin.xlane.f32.xlu0 %v227_v17 }
 0xd5c   :  { %v229_v19 = vpop.xlane.xlu0 %228 }
 0xd5d   :  { %vm230_vm13 = vcmp.eq.f32.partialorder %v227_v17, %v229_v19  ;;  %v235_v22 = vcvt.f32.s32 %v229_v19 }
 0xd5e   :  { %v231_v21 = vsel %vm230_vm13, %v226_v20, inf }
 0xd5f   :  { %232 = vmin.xlane.f32.xlu1 %v231_v21  ;;  %v236_v24 = vshll.u32 %v235_v22, 16 }
 0xdec   :  { %v233_v23 = vpop.xlane.xlu1 %232 }
 0xded   :  { %v234_v25 = vcvt.f32.s32 %v233_v23 }
 0xdef   :  { %v237_v26 = vadd.s32 %v236_v24, %v234_v25 }
 0xdf1   :  { %vm238_vm14 = vcmp.eq.s32.totalorder %v343_v4, %v237_v26  ;;  %vm239_vm15 = vcmp.eq.s32.totalorder %v346_v5, %v237_v26 }
 0xdf2   :  { %v240_v27 = vsel %vm238_vm14, -inf, %v213_v9  ;;  %v241_v28 = vsel %vm239_vm15, -inf, %v214_v10 }
 0xdf3   :  { %vm242_vm0 = vcmp.eq.f32.partialorder %v240_v27, -inf  ;;  %vm243_vm1 = vcmp.eq.f32.partialorder %v241_v28, -inf }
 0xdf4   :  { %v244_v29 = vsel %vm242_vm0, %v337_v0, 0.0  ;;  %v245_v30 = vsel %vm243_vm1, %v339_v1, 0.0 }
 0xdf5   :  { %246 = vst [vmem:[#allocation5] sm:$0xff] %v244_v29  ;;  %247 = vst [vmem:[#allocation5 + $0x8] sm:$0xff] %v245_v30 }
 0xdf6   :  { %298 = shalt.err (!%p295_p12)
}
 0xdf7   :  { %s299_s22 = scalar_lea.hbm %s399_s1, 256 }
 0xdf8   :  { %p300_p13 = scmp.ne.s32.totalorder %s399_s1, %s299_s22  ;;  %p303_p0 = scmp.lt.u32.totalorder %s299_s22, %s399_s1 }
 0xdfa   :  { %p305_p1 = pnand %p303_p0, %p300_p13 }
 0xdfc   :  { %308 = shalt.err (!%p305_p1)
}
 0xdfd   :  { %257 = dma.vmem_to_hbm [thread:$0]  %s255_s18, 256, %s399_s1, [#allocation4]  }
 0xdfe   :  { %311 = dma.done.wait [#allocation4], 256  }
 0xdff   :  { %312 = vsyncadd [#allocation4], 4294967040 }
 0xe00   :  { %261 = vsyncpa [#allocation3], 1 }
 0xe01   :  { %262 = vsyncpa [#allocation4], 1 }

</bundles_post_ra>
